<compile_context>
chip_gen: v6e
topology: v6e:2x2x1
jax: 0.10.0
libtpu: 0.0.40
codegen_flags: <defaults>
</compile_context>

<pallas_src>
import functools

import jax
import jax.numpy as jnp
from jax import lax
from jax.experimental import pallas as pl
from jax.experimental.pallas import tpu as pltpu


def _cls_head_kernel(x_ref, w1_ref, b1_ref, w2_ref, b2_ref, o_ref,
                     xpad_ref, patches_ref, *, C, H, W, AK):
    HW = H * W
    PAD = W + 1
    SIZE = HW + 2 * PAD

    # ---- build the zero-padded flattened image for this batch element -----
    x_bf16 = x_ref[0].astype(jnp.bfloat16)                    # (C, HW)
    xpad_ref[:, 0:PAD] = jnp.zeros((C, PAD), jnp.bfloat16)
    xpad_ref[:, PAD:PAD + HW] = x_bf16
    xpad_ref[:, PAD + HW:SIZE] = jnp.zeros((C, PAD), jnp.bfloat16)

    # Column-validity masks for the left / right taps (fix row wraparound of
    # the flattened halo).
    col = lax.broadcasted_iota(jnp.int32, (1, HW), 1) % W
    left_ok = col >= 1                 # reading column w-1 is valid
    right_ok = col <= W - 2            # reading column w+1 is valid

    # ---- im2col: 9 shifted views written straight into the patch scratch --
    for dy in range(3):
        for dx in range(3):
            s = dy * W + dx            # slice start; offset = s - (W+1)
            v = xpad_ref[:, s:s + HW]  # (C, HW) bf16, static lane slice
            if dx == 0:
                v = jnp.where(left_ok, v, jnp.zeros_like(v))
            elif dx == 2:
                v = jnp.where(right_ok, v, jnp.zeros_like(v))
            tap = dy * 3 + dx
            patches_ref[tap * C:(tap + 1) * C, :] = v          # lane-aligned

    # ---- conv3x3 as one GEMM (K = 9*C), bias + ReLU in f32 -----------------
    h1 = jnp.dot(w1_ref[...], patches_ref[...],
                 preferred_element_type=jnp.float32)            # (C, HW)
    h1 = jnp.maximum(h1 + b1_ref[...], 0.0)

    # ---- conv1x1 GEMM + bias -----------------------------------------------
    out = jnp.dot(w2_ref[...], h1.astype(w2_ref.dtype),
                  preferred_element_type=jnp.float32)           # (AK, HW)
    o_ref[0] = out + b2_ref[...]


def prepare_params(w1, b1, w2, b2):
    """One-time weight layout prep (model constants — hoisted out of the
    per-call path so no tiny XLA transpose/cast ops run per forward).

    Args:
      w1: (9, C, C)  3x3 conv weight, w1[dy*3+dx, cin, cout].
      b1: (C,)
      w2: (C, A*K)   1x1 conv weight, w2[cin, a*K + p].
      b2: (A*K,)
    """
    C = w1.shape[1]
    AK = w2.shape[1]
    w1_mat = jnp.transpose(w1, (2, 0, 1)).reshape(C, 9 * C).astype(jnp.bfloat16)
    w2_mat = jnp.transpose(w2, (1, 0)).astype(jnp.bfloat16)     # (AK, C)
    b1_col = b1.reshape(C, 1).astype(jnp.float32)
    b2_col = b2.reshape(AK, 1).astype(jnp.float32)
    return w1_mat, b1_col, w2_mat, b2_col


@functools.partial(jax.jit, static_argnames=("num_anchors", "num_classes"))
def classification_head(x_nchw, w1_mat, b1_col, w2_mat, b2_col,
                        num_anchors, num_classes):
    """Forward pass matching the PyTorch ClassificationHead.

    Returns (B, num_anchors, H, W, num_classes) float32, i.e.
    Rearrange('b (a p) h w -> b a h w p')(conv2(relu(conv1(x)))).
    """
    B, C, H, W = x_nchw.shape
    A, K = num_anchors, num_classes
    AK = A * K
    HW = H * W
    SIZE = HW + 2 * (W + 1)

    # Contiguous, layout-free reshape only; x stays f32 (cast happens in VMEM).
    x_flat = x_nchw.reshape(B, C, HW)

    kernel = functools.partial(_cls_head_kernel, C=C, H=H, W=W, AK=AK)

    out_flat = pl.pallas_call(
        kernel,
        out_shape=jax.ShapeDtypeStruct((B, AK, HW), jnp.float32),
        grid_spec=pltpu.PrefetchScalarGridSpec(
            num_scalar_prefetch=0,
            grid=(B,),
            in_specs=[
                pl.BlockSpec((1, C, HW), lambda b: (b, 0, 0)),
                pl.BlockSpec((C, 9 * C), lambda b: (0, 0)),
                pl.BlockSpec((C, 1), lambda b: (0, 0)),
                pl.BlockSpec((AK, C), lambda b: (0, 0)),
                pl.BlockSpec((AK, 1), lambda b: (0, 0)),
            ],
            out_specs=pl.BlockSpec((1, AK, HW), lambda b: (b, 0, 0)),
            scratch_shapes=[
                pltpu.VMEM((C, SIZE), jnp.bfloat16),       # padded image
                pltpu.VMEM((9 * C, HW), jnp.bfloat16),     # im2col patches
            ],
        ),
        compiler_params=pltpu.CompilerParams(
            dimension_semantics=("parallel",)),
    )(x_flat, w1_mat, b1_col, w2_mat, b2_col)

    # Glue: channel c = a*K + p  ->  'b (a p) h w -> b a h w p'
    out = out_flat.reshape(B, A, K, H, W)
    return jnp.transpose(out, (0, 1, 3, 4, 2))   # (B, A, H, W, K)


def _reference(x_nchw, w1, b1, w2, b2, num_anchors, num_classes):
    """Pure-JAX f32 reference (conv via lax) for correctness checking."""
    B, C, H, W = x_nchw.shape
    x_nhwc = jnp.transpose(x_nchw, (0, 2, 3, 1))
    w1_hwio = w1.reshape(3, 3, C, C)  # tap index (dy*3+dx) -> (3,3) row-major
    y = jax.lax.conv_general_dilated(
        x_nhwc, w1_hwio, window_strides=(1, 1), padding="SAME",
        dimension_numbers=("NHWC", "HWIO", "NHWC"))
    y = jax.nn.relu(y + b1)
    y = jnp.einsum("bhwc,cd->bhwd", y, w2) + b2
    y = y.reshape(B, H, W, num_anchors, num_classes)
    return jnp.transpose(y, (0, 3, 1, 2, 4))


if __name__ == "__main__":
    B, C, H, W = 2, 32, 16, 16
    num_anchors, num_classes = 4, 8
    AK = num_anchors * num_classes

    key = jax.random.PRNGKey(0)
    k_x, k_w1, k_b1, k_w2, k_b2 = jax.random.split(key, 5)
    x = jax.random.normal(k_x, (B, C, H, W), dtype=jnp.float32)
    w1 = jax.random.normal(k_w1, (9, C, C), dtype=jnp.float32) * 0.05
    b1 = jax.random.normal(k_b1, (C,), dtype=jnp.float32) * 0.05
    w2 = jax.random.normal(k_w2, (C, AK), dtype=jnp.float32) * 0.05
    b2 = jax.random.normal(k_b2, (AK,), dtype=jnp.float32) * 0.05

    params = prepare_params(w1, b1, w2, b2)        # one-time weight prep
    out = classification_head(x, *params,
                              num_anchors=num_anchors,
                              num_classes=num_classes)
    out = jax.block_until_ready(out)
    assert out.shape == (B, num_anchors, H, W, num_classes), out.shape

    ref = _reference(x, w1, b1, w2, b2, num_anchors, num_classes)
    ref = jax.block_until_ready(ref)
    max_err = float(jnp.max(jnp.abs(out - ref)))
    # bf16 MXU operands with f32 accumulation -> loosened tolerance vs f32 ref.
    assert jnp.allclose(out, ref, atol=2e-2, rtol=2e-2), max_err

    print("KERNEL_OK")
</pallas_src>

<mosaic_0001>
module attributes {stable_mosaic.version = 11 : i64} {
  func.func @_cls_head_kernel(%arg0: i32, %arg1: memref<1x32x256xf32, #tpu.memory_space<vmem>>, %arg2: memref<32x288xbf16, #tpu.memory_space<vmem>>, %arg3: memref<32x1xf32, #tpu.memory_space<vmem>>, %arg4: memref<32x32xbf16, #tpu.memory_space<vmem>>, %arg5: memref<32x1xf32, #tpu.memory_space<vmem>>, %arg6: memref<1x32x256xf32, #tpu.memory_space<vmem>>, %arg7: memref<32x290xbf16, #tpu.memory_space<vmem>>, %arg8: memref<288x256xbf16, #tpu.memory_space<vmem>>) attributes {dimension_semantics = [#tpu.dimension_semantics<parallel>], iteration_bounds = array<i64: 2>, scalar_prefetch = 0 : i64, scratch_operands = 2 : i64, tpu.core_type = #tpu.core_type<tc>, window_params = [{transform_indices = @transform_0, window_bounds = array<i64: 1, 32, 256>}, {pipeline_mode = #tpu.pipeline_mode<synchronous>, transform_indices = @transform_1, window_bounds = array<i64: 32, 288>}, {pipeline_mode = #tpu.pipeline_mode<synchronous>, transform_indices = @transform_2, window_bounds = array<i64: 32, 1>}, {pipeline_mode = #tpu.pipeline_mode<synchronous>, transform_indices = @transform_3, window_bounds = array<i64: 32, 32>}, {pipeline_mode = #tpu.pipeline_mode<synchronous>, transform_indices = @transform_4, window_bounds = array<i64: 32, 1>}, {transform_indices = @transform_5, window_bounds = array<i64: 1, 32, 256>}]} {
    %c0 = arith.constant 0 : index
    %c0_0 = arith.constant 0 : index
    %c0_1 = arith.constant 0 : index
    %0 = vector.load %arg1[%c0, %c0_0, %c0_1] : memref<1x32x256xf32, #tpu.memory_space<vmem>>, vector<1x32x256xf32>
    %1 = vector.shape_cast %0 : vector<1x32x256xf32> to vector<32x256xf32>
    %2 = arith.truncf %1 : vector<32x256xf32> to vector<32x256xbf16>
    %cst = arith.constant 0.000000e+00 : bf16
    %3 = vector.broadcast %cst : bf16 to vector<32x17xbf16>
    %c0_2 = arith.constant 0 : index
    %c0_3 = arith.constant 0 : index
    %4 = vector.load %arg7[%c0_2, %c0_3] : memref<32x290xbf16, #tpu.memory_space<vmem>>, vector<32x17xbf16>
    tpu.vector_store %arg7[%c0_2, %c0_3], %3 {strides = array<i32>} : memref<32x290xbf16, #tpu.memory_space<vmem>>, vector<32x17xbf16>,
    %c0_4 = arith.constant 0 : index
    %c17 = arith.constant 17 : index
    %5 = vector.load %arg7[%c0_4, %c17] : memref<32x290xbf16, #tpu.memory_space<vmem>>, vector<32x256xbf16>
    tpu.vector_store %arg7[%c0_4, %c17], %2 {strides = array<i32>} : memref<32x290xbf16, #tpu.memory_space<vmem>>, vector<32x256xbf16>,
    %cst_5 = arith.constant 0.000000e+00 : bf16
    %6 = vector.broadcast %cst_5 : bf16 to vector<32x17xbf16>
    %c0_6 = arith.constant 0 : index
    %c273 = arith.constant 273 : index
    %7 = vector.load %arg7[%c0_6, %c273] : memref<32x290xbf16, #tpu.memory_space<vmem>>, vector<32x17xbf16>
    tpu.vector_store %arg7[%c0_6, %c273], %6 {strides = array<i32>} : memref<32x290xbf16, #tpu.memory_space<vmem>>, vector<32x17xbf16>,
    %8 = tpu.iota {dimensions = array<i32: 1>} : vector<1x256xi32>
    %c16_i32 = arith.constant 16 : i32
    %c0_i32 = arith.constant 0 : i32
    %9 = arith.cmpi eq, %c16_i32, %c0_i32 : i32
    %c1_i32 = arith.constant 1 : i32
    %10 = arith.select %9, %c1_i32, %c16_i32 : i32
    %11 = vector.broadcast %10 : i32 to vector<1x256xi32>
    %12 = arith.remsi %8, %11 : vector<1x256xi32>
    %c0_i32_7 = arith.constant 0 : i32
    %13 = vector.broadcast %c0_i32_7 : i32 to vector<1x256xi32>
    %14 = arith.cmpi ne, %12, %13 : vector<1x256xi32>
    %c0_i32_8 = arith.constant 0 : i32
    %15 = vector.broadcast %c0_i32_8 : i32 to vector<1x256xi32>
    %16 = arith.cmpi slt, %12, %15 : vector<1x256xi32>
    %c0_i32_9 = arith.constant 0 : i32
    %17 = arith.cmpi slt, %10, %c0_i32_9 : i32
    %18 = vector.broadcast %17 : i1 to vector<1x256xi1>
    %19 = vector.broadcast %18 : vector<1x256xi1> to vector<1x256xi1>
    %20 = arith.xori %16, %19 : vector<1x256xi1>
    %21 = arith.andi %20, %14 : vector<1x256xi1>
    %22 = vector.broadcast %10 : i32 to vector<1x256xi32>
    %23 = arith.addi %12, %22 : vector<1x256xi32>
    %24 = arith.select %21, %23, %12 : vector<1x256xi1>, vector<1x256xi32>
    %c1_i32_10 = arith.constant 1 : i32
    %25 = vector.broadcast %c1_i32_10 : i32 to vector<1x256xi32>
    %26 = arith.cmpi sge, %24, %25 : vector<1x256xi32>
    %c14_i32 = arith.constant 14 : i32
    %27 = vector.broadcast %c14_i32 : i32 to vector<1x256xi32>
    %28 = arith.cmpi sle, %24, %27 : vector<1x256xi32>
    %c0_11 = arith.constant 0 : index
    %c0_12 = arith.constant 0 : index
    %29 = vector.load %arg7[%c0_11, %c0_12] : memref<32x290xbf16, #tpu.memory_space<vmem>>, vector<32x256xbf16>
    %cst_13 = arith.constant 0.000000e+00 : bf16
    %30 = vector.broadcast %cst_13 : bf16 to vector<32x256xbf16>
    %31 = vector.shape_cast %26 : vector<1x256xi1> to vector<1x256xi1>
    %32 = vector.broadcast %31 : vector<1x256xi1> to vector<32x256xi1>
    %33 = arith.select %32, %29, %30 : vector<32x256xi1>, vector<32x256xbf16>
    %c0_14 = arith.constant 0 : index
    %c0_15 = arith.constant 0 : index
    %34 = vector.load %arg8[%c0_14, %c0_15] : memref<288x256xbf16, #tpu.memory_space<vmem>>, vector<32x256xbf16>
    tpu.vector_store %arg8[%c0_14, %c0_15], %33 {strides = array<i32>} : memref<288x256xbf16, #tpu.memory_space<vmem>>, vector<32x256xbf16>,
    %c0_16 = arith.constant 0 : index
    %c1 = arith.constant 1 : index
    %35 = vector.load %arg7[%c0_16, %c1] : memref<32x290xbf16, #tpu.memory_space<vmem>>, vector<32x256xbf16>
    %c32 = arith.constant 32 : index
    %c0_17 = arith.constant 0 : index
    %36 = vector.load %arg8[%c32, %c0_17] : memref<288x256xbf16, #tpu.memory_space<vmem>>, vector<32x256xbf16>
    tpu.vector_store %arg8[%c32, %c0_17], %35 {strides = array<i32>} : memref<288x256xbf16, #tpu.memory_space<vmem>>, vector<32x256xbf16>,
    %c0_18 = arith.constant 0 : index
    %c2 = arith.constant 2 : index
    %37 = vector.load %arg7[%c0_18, %c2] : memref<32x290xbf16, #tpu.memory_space<vmem>>, vector<32x256xbf16>
    %cst_19 = arith.constant 0.000000e+00 : bf16
    %38 = vector.broadcast %cst_19 : bf16 to vector<32x256xbf16>
    %39 = vector.shape_cast %28 : vector<1x256xi1> to vector<1x256xi1>
    %40 = vector.broadcast %39 : vector<1x256xi1> to vector<32x256xi1>
    %41 = arith.select %40, %37, %38 : vector<32x256xi1>, vector<32x256xbf16>
    %c64 = arith.constant 64 : index
    %c0_20 = arith.constant 0 : index
    %42 = vector.load %arg8[%c64, %c0_20] : memref<288x256xbf16, #tpu.memory_space<vmem>>, vector<32x256xbf16>
    tpu.vector_store %arg8[%c64, %c0_20], %41 {strides = array<i32>} : memref<288x256xbf16, #tpu.memory_space<vmem>>, vector<32x256xbf16>,
    %c0_21 = arith.constant 0 : index
    %c16 = arith.constant 16 : index
    %43 = vector.load %arg7[%c0_21, %c16] : memref<32x290xbf16, #tpu.memory_space<vmem>>, vector<32x256xbf16>
    %cst_22 = arith.constant 0.000000e+00 : bf16
    %44 = vector.broadcast %cst_22 : bf16 to vector<32x256xbf16>
    %45 = vector.shape_cast %26 : vector<1x256xi1> to vector<1x256xi1>
    %46 = vector.broadcast %45 : vector<1x256xi1> to vector<32x256xi1>
    %47 = arith.select %46, %43, %44 : vector<32x256xi1>, vector<32x256xbf16>
    %c96 = arith.constant 96 : index
    %c0_23 = arith.constant 0 : index
    %48 = vector.load %arg8[%c96, %c0_23] : memref<288x256xbf16, #tpu.memory_space<vmem>>, vector<32x256xbf16>
    tpu.vector_store %arg8[%c96, %c0_23], %47 {strides = array<i32>} : memref<288x256xbf16, #tpu.memory_space<vmem>>, vector<32x256xbf16>,
    %c0_24 = arith.constant 0 : index
    %c17_25 = arith.constant 17 : index
    %49 = vector.load %arg7[%c0_24, %c17_25] : memref<32x290xbf16, #tpu.memory_space<vmem>>, vector<32x256xbf16>
    %c128 = arith.constant 128 : index
    %c0_26 = arith.constant 0 : index
    %50 = vector.load %arg8[%c128, %c0_26] : memref<288x256xbf16, #tpu.memory_space<vmem>>, vector<32x256xbf16>
    tpu.vector_store %arg8[%c128, %c0_26], %49 {strides = array<i32>} : memref<288x256xbf16, #tpu.memory_space<vmem>>, vector<32x256xbf16>,
    %c0_27 = arith.constant 0 : index
    %c18 = arith.constant 18 : index
    %51 = vector.load %arg7[%c0_27, %c18] : memref<32x290xbf16, #tpu.memory_space<vmem>>, vector<32x256xbf16>
    %cst_28 = arith.constant 0.000000e+00 : bf16
    %52 = vector.broadcast %cst_28 : bf16 to vector<32x256xbf16>
    %53 = vector.shape_cast %28 : vector<1x256xi1> to vector<1x256xi1>
    %54 = vector.broadcast %53 : vector<1x256xi1> to vector<32x256xi1>
    %55 = arith.select %54, %51, %52 : vector<32x256xi1>, vector<32x256xbf16>
    %c160 = arith.constant 160 : index
    %c0_29 = arith.constant 0 : index
    %56 = vector.load %arg8[%c160, %c0_29] : memref<288x256xbf16, #tpu.memory_space<vmem>>, vector<32x256xbf16>
    tpu.vector_store %arg8[%c160, %c0_29], %55 {strides = array<i32>} : memref<288x256xbf16, #tpu.memory_space<vmem>>, vector<32x256xbf16>,
    %c0_30 = arith.constant 0 : index
    %c32_31 = arith.constant 32 : index
    %57 = vector.load %arg7[%c0_30, %c32_31] : memref<32x290xbf16, #tpu.memory_space<vmem>>, vector<32x256xbf16>
    %cst_32 = arith.constant 0.000000e+00 : bf16
    %58 = vector.broadcast %cst_32 : bf16 to vector<32x256xbf16>
    %59 = vector.shape_cast %26 : vector<1x256xi1> to vector<1x256xi1>
    %60 = vector.broadcast %59 : vector<1x256xi1> to vector<32x256xi1>
    %61 = arith.select %60, %57, %58 : vector<32x256xi1>, vector<32x256xbf16>
    %c192 = arith.constant 192 : index
    %c0_33 = arith.constant 0 : index
    %62 = vector.load %arg8[%c192, %c0_33] : memref<288x256xbf16, #tpu.memory_space<vmem>>, vector<32x256xbf16>
    tpu.vector_store %arg8[%c192, %c0_33], %61 {strides = array<i32>} : memref<288x256xbf16, #tpu.memory_space<vmem>>, vector<32x256xbf16>,
    %c0_34 = arith.constant 0 : index
    %c33 = arith.constant 33 : index
    %63 = vector.load %arg7[%c0_34, %c33] : memref<32x290xbf16, #tpu.memory_space<vmem>>, vector<32x256xbf16>
    %c224 = arith.constant 224 : index
    %c0_35 = arith.constant 0 : index
    %64 = vector.load %arg8[%c224, %c0_35] : memref<288x256xbf16, #tpu.memory_space<vmem>>, vector<32x256xbf16>
    tpu.vector_store %arg8[%c224, %c0_35], %63 {strides = array<i32>} : memref<288x256xbf16, #tpu.memory_space<vmem>>, vector<32x256xbf16>,
    %c0_36 = arith.constant 0 : index
    %c34 = arith.constant 34 : index
    %65 = vector.load %arg7[%c0_36, %c34] : memref<32x290xbf16, #tpu.memory_space<vmem>>, vector<32x256xbf16>
    %cst_37 = arith.constant 0.000000e+00 : bf16
    %66 = vector.broadcast %cst_37 : bf16 to vector<32x256xbf16>
    %67 = vector.shape_cast %28 : vector<1x256xi1> to vector<1x256xi1>
    %68 = vector.broadcast %67 : vector<1x256xi1> to vector<32x256xi1>
    %69 = arith.select %68, %65, %66 : vector<32x256xi1>, vector<32x256xbf16>
    %c256 = arith.constant 256 : index
    %c0_38 = arith.constant 0 : index
    %70 = vector.load %arg8[%c256, %c0_38] : memref<288x256xbf16, #tpu.memory_space<vmem>>, vector<32x256xbf16>
    tpu.vector_store %arg8[%c256, %c0_38], %69 {strides = array<i32>} : memref<288x256xbf16, #tpu.memory_space<vmem>>, vector<32x256xbf16>,
    %c0_39 = arith.constant 0 : index
    %c0_40 = arith.constant 0 : index
    %71 = vector.load %arg2[%c0_39, %c0_40] : memref<32x288xbf16, #tpu.memory_space<vmem>>, vector<32x288xbf16>
    %c0_41 = arith.constant 0 : index
    %c0_42 = arith.constant 0 : index
    %72 = vector.load %arg8[%c0_41, %c0_42] : memref<288x256xbf16, #tpu.memory_space<vmem>>, vector<288x256xbf16>
    %cst_43 = arith.constant dense<0.000000e+00> : vector<32x256xf32>
    %73 = tpu.matmul %71, %72, %cst_43 {dimension_numbers = #tpu.dot_dimension_numbers<[1], [0], [0], [1], [0, 0, 1, 1], [], []>} : vector<32x288xbf16>, vector<288x256xbf16>, vector<32x256xf32> -> vector<32x256xf32>
    %c0_44 = arith.constant 0 : index
    %c0_45 = arith.constant 0 : index
    %74 = vector.load %arg3[%c0_44, %c0_45] : memref<32x1xf32, #tpu.memory_space<vmem>>, vector<32x1xf32>
    %75 = vector.broadcast %74 : vector<32x1xf32> to vector<32x256xf32>
    %76 = arith.addf %73, %75 : vector<32x256xf32>
    %cst_46 = arith.constant 0.000000e+00 : f32
    %77 = vector.broadcast %cst_46 : f32 to vector<32x256xf32>
    %78 = arith.maximumf %76, %77 : vector<32x256xf32>
    %c0_47 = arith.constant 0 : index
    %c0_48 = arith.constant 0 : index
    %79 = vector.load %arg4[%c0_47, %c0_48] : memref<32x32xbf16, #tpu.memory_space<vmem>>, vector<32x32xbf16>
    %80 = arith.truncf %78 : vector<32x256xf32> to vector<32x256xbf16>
    %cst_49 = arith.constant dense<0.000000e+00> : vector<32x256xf32>
    %81 = tpu.matmul %79, %80, %cst_49 {dimension_numbers = #tpu.dot_dimension_numbers<[1], [0], [0], [1], [0, 0, 1, 1], [], []>} : vector<32x32xbf16>, vector<32x256xbf16>, vector<32x256xf32> -> vector<32x256xf32>
    %c0_50 = arith.constant 0 : index
    %c0_51 = arith.constant 0 : index
    %82 = vector.load %arg5[%c0_50, %c0_51] : memref<32x1xf32, #tpu.memory_space<vmem>>, vector<32x1xf32>
    %83 = vector.broadcast %82 : vector<32x1xf32> to vector<32x256xf32>
    %84 = arith.addf %81, %83 : vector<32x256xf32>
    %c0_52 = arith.constant 0 : index
    %c0_53 = arith.constant 0 : index
    %c0_54 = arith.constant 0 : index
    %85 = vector.load %arg6[%c0_52, %c0_53, %c0_54] : memref<1x32x256xf32, #tpu.memory_space<vmem>>, vector<1x32x256xf32>
    %86 = vector.shape_cast %85 : vector<1x32x256xf32> to vector<32x256xf32>
    %87 = vector.shape_cast %84 : vector<32x256xf32> to vector<1x32x256xf32>
    tpu.vector_store %arg6[%c0_52, %c0_53, %c0_54], %87 {strides = array<i32>} : memref<1x32x256xf32, #tpu.memory_space<vmem>>, vector<1x32x256xf32>,
    return
  }
  func.func @transform_0(%arg0: i32) -> (i32, i32, i32) {
    %c0_i32 = arith.constant 0 : i32
    %c0_i32_0 = arith.constant 0 : i32
    %c0_i32_1 = arith.constant 0 : i32
    return %arg0, %c0_i32, %c0_i32_0 : i32, i32, i32
  }
  func.func @transform_1(%arg0: i32) -> (i32, i32) {
    %c0_i32 = arith.constant 0 : i32
    %c0_i32_0 = arith.constant 0 : i32
    %c0_i32_1 = arith.constant 0 : i32
    return %c0_i32, %c0_i32_0 : i32, i32
  }
  func.func @transform_2(%arg0: i32) -> (i32, i32) {
    %c0_i32 = arith.constant 0 : i32
    %c0_i32_0 = arith.constant 0 : i32
    %c0_i32_1 = arith.constant 0 : i32
    return %c0_i32, %c0_i32_0 : i32, i32
  }
  func.func @transform_3(%arg0: i32) -> (i32, i32) {
    %c0_i32 = arith.constant 0 : i32
    %c0_i32_0 = arith.constant 0 : i32
    %c0_i32_1 = arith.constant 0 : i32
    return %c0_i32, %c0_i32_0 : i32, i32
  }
  func.func @transform_4(%arg0: i32) -> (i32, i32) {
    %c0_i32 = arith.constant 0 : i32
    %c0_i32_0 = arith.constant 0 : i32
    %c0_i32_1 = arith.constant 0 : i32
    return %c0_i32, %c0_i32_0 : i32, i32
  }
  func.func @transform_5(%arg0: i32) -> (i32, i32, i32) {
    %c0_i32 = arith.constant 0 : i32
    %c0_i32_0 = arith.constant 0 : i32
    %c0_i32_1 = arith.constant 0 : i32
    return %arg0, %c0_i32, %c0_i32_0 : i32, i32, i32
  }
}

</mosaic_0001>

<bundles_post_ra>
// kernel: classification_head.1
= control target key start
LH: loop header
LB: loop body
LE: loop exit
PB: predicated region body
PF: predicated region fallthrough
CT: control target
= control target key end

     0   :  { %s1609_s18 = smov 0   ;;  %s2043_s0 = inlined_call_operand.vmem [shape: f32[2,32,256], index: 0, kind: input, shape index: {}]   ;;  %s2044_s1 = inlined_call_operand.vmem [shape: bf16[32,288], index: 1, kind: input, shape index: {}]   ;;  %s2045_s2 = inlined_call_operand.vmem [shape: f32[32,1], index: 2, kind: input, shape index: {}]   ;;  %s2046_s3 = inlined_call_operand.vmem [shape: bf16[32,32], index: 3, kind: input, shape index: {}]   ;;  %s2047_s4 = inlined_call_operand.vmem [shape: f32[32,1], index: 4, kind: input, shape index: {}]   ;;  %s2048_s5 = inlined_call_operand.vmem [shape: f32[2,32,256], index: 5, kind: output, shape index: {}]  }
   0x1 LB: > { %s1452_s19 = sadd.s32 4294967295, %s1562_s18   ;;  %p1456_p0 = scmp.ge.s32.totalorder %s1562_s18, 1  ;;  %s1562_s18 = sphi %s1609_s18, %s15_s18  }
   0x2   : > { %p187_p1 = scmp.lt.s32.totalorder %s1562_s18, 3 }
   0x4   : > { %p188_p2 = pnand %p1456_p0, %p187_p1 }
   0x5   : > { %p215_p3 = scmp.lt.s32.totalorder (!%p188_p2), %s1452_s19, 1  ;;  %s1565_s24 = smov (!%p188_p2), 17  }
   0x6   : > { %191 = sbr.rel (%p188_p2) target bundleno = 826 (0x33a), region = 40  ;;  %s1566_s25 = smov (!%p188_p2), 16  }
   0x7   : > { %s1567_s26 = smov (!%p188_p2), 2   ;;  %s1568_s27 = smov (!%p188_p2), 32  }
   0x8   : > { %s1569_s28 = smov (!%p188_p2), 18   ;;  %s1570_s29 = smov (!%p188_p2), 34  }
   0x9   : > { %s1571_s30 = smov (!%p188_p2), 127   ;;  %s1572_s6 = smov (!%p188_p2), 95  }
   0xa   : > { %s1573_s7 = smov (!%p188_p2), 111   ;;  %s1574_s8 = smov (!%p188_p2), 112  }
   0xb   : > { %v302_v0 = vlaneseq  ;;  %vm240_vm0 = vcmask 134144   ;;  %v1564_v1 = vmov 0   ;;  %s2064_s19 = smov (!%p215_p3, %s1452_s19), 1  ;;  %vm286_vm7 = vcmask 1043592   ;;  %s1575_s9 = smov 126  }
   0xc   : > { %243 = vst.msk [vmem:[#allocation2 + $0x18] sm:$0xf] %vm240_vm0, %v1564_v1  ;;  %241 = vst.msk [vmem:[#allocation2] sm:$0xf] %vm240_vm0, %v1564_v1  ;;  %1259 = vmatprep.mubr.bf16.mxu1 %v1564_v1  ;;  %1544 = vset.pattern.permute.xlu1 %v1564_v1  ;;  %s1515_s20 = sshll.u32 %s2064_s19, 6  ;;  %vm287_vm8 = vcmask 1047556  }
   0xd   : > { %242 = vst.msk [vmem:[#allocation2 + $0xc] sm:$0xf] %vm240_vm0, %v1564_v1  ;;  %244 = vst.msk [vmem:[#allocation2 + $0x24] sm:$0xf] %vm240_vm0, %v1564_v1  ;;  %v303_v2 = vand.u32 127, %v302_v0  ;;  %1545 = vset.pattern.permute.xlu0 %v1564_v1  ;;  %s219_s23 = scalar_lea.vmem %s2043_s0, %s1515_s20  ;;  %vm273_vm9 = vcmask 138240  }
   0xe   : > { %v232_v5 = vld [vmem:[%s219_s23 + $0x20] sm:$0xff]  ;;  %v233_v6 = vld [vmem:[%s219_s23 + $0x28] sm:$0xff]  ;;  %v234_v11 = vld [vmem:[%s219_s23 + $0x30] sm:$0xff]  ;;  %vm297_vm11 = vcmask 273544   ;;  %vm498_vm12 = vcmask 130048   ;;  %vm425_vm15 = vcmask 15360  }
   0xf   : > { %v304_v3 = vadd.s32 128, %v303_v2  ;;  %v309_v4 = vand.u32 15, %v303_v2  ;;  %v228_v7 = vld [vmem:[%s219_s23] sm:$0xff]  ;;  %v1519_v9 = vpack.c.bf16 %v233_v6, %v232_v5  ;;  %v229_v10 = vld [vmem:[%s219_s23 + $0x8] sm:$0xff]  ;;  %v235_v12 = vld [vmem:[%s219_s23 + $0x38] sm:$0xff]  ;;  %s1576_s10 = smov 96  }
  0x10   : > { %v1517_v13 = vpack.c.bf16 %v229_v10, %v228_v7  ;;  %v230_v14 = vld [vmem:[%s219_s23 + $0x10] sm:$0xff]  ;;  %v231_v15 = vld [vmem:[%s219_s23 + $0x18] sm:$0xff]  ;;  %v1520_v16 = vpack.c.bf16 %v235_v12, %v234_v11  ;;  %vm1644_vm10 = vmor %vm287_vm8, %vm286_vm7  ;;  %s1577_s11 = smov 110   ;;  %s1578_s12 = smov 94  }
  0x11   : > { %v316_v8 = vand.u32 15, %v304_v3  ;;  %vm329_vm1 = vcmp.ge.s32.totalorder %v309_v4, 1  ;;  %265 = vrot.lane.b32.xlu0 %v1519_v9, %s1565_s24  ;;  %vm331_vm3 = vcmp.le.s32.totalorder %v309_v4, 14  ;;  %v1518_v17 = vpack.c.bf16 %v231_v15, %v230_v14 }
  0x12   : > { %261 = vrot.lane.b32.xlu1 %v1517_v13, %s1565_s24 }
  0x13   : > { %vm330_vm2 = vcmp.ge.s32.totalorder %v316_v8, 1  ;;  %vm332_vm4 = vcmp.le.s32.totalorder %v316_v8, 14 }
  0x14   : > { %vm1636_vm5 = vmpackc.low %vm330_vm2, %vm329_vm1  ;;  %vm699_vm2 = vcmask 261120  }
  0x15   : > { %vm420_vm6 = vmpackc.low %vm332_vm4, %vm331_vm3  ;;  %267 = vrot.lane.b32.xlu0 %v1520_v16, %s1565_s24  ;;  %v494_v19 = vsel %vm1636_vm5, 65537, %v1564_v1 }
  0x16   : > { %263 = vrot.lane.b32.xlu1 %v1518_v17, %s1565_s24  ;;  %v421_v20 = vsel %vm420_vm6, 65537, %v1564_v1  ;;  %vm627_vm6 = vcmask 146432  }
  0x19   : > { %495 = vrot.lane.b32.xlu0 %v494_v19, %s1566_s25 }
  0x1a   : > { %422 = vrot.lane.b32.xlu1 %v421_v20, %s1567_s26 }
  0x1d   : > { %696 = vrot.lane.b32.xlu0 %v494_v19, %s1568_s27 }
  0x1e   : > { %624 = vrot.lane.b32.xlu1 %v421_v20, %s1569_s28  ;;  %s224_s28 = scalar_lea.vmem %s2048_s5, %s1515_s20 }
  0x21   : > { %825 = vrot.lane.b32.xlu0 %v421_v20, %s1570_s29 }
  0x83   : > { %v266_v21 = vpop.permute.xlu0 %265 }
  0x84   : > { %v271_v23 = vrot.slane %v266_v21, 4  ;;  %v262_v24 = vpop.permute.xlu1 %261 }
  0x85   : > { %v269_v25 = vrot.slane %v262_v24, 4 }
  0x86   : > { %v276_v26 = vsel %vm273_vm9, %v271_v23, %v266_v21  ;;  %294 = vst.msk [vmem:[#allocation2 + $0x20] sm:$0xf] %vm240_vm0, %v271_v23 }
  0x87   : > { %293 = vst.msk [vmem:[#allocation2 + $0x18] sm:$0xff] %vm1644_vm10, %v276_v26  ;;  %v274_v27 = vsel %vm273_vm9, %v269_v25, %v262_v24  ;;  %v268_v28 = vpop.permute.xlu0 %267 }
  0x88   : > { %300 = vst.msk [vmem:[#allocation2 + $0x20] sm:$0xf] %vm297_vm11, %v1564_v1  ;;  %v272_v29 = vrot.slane %v268_v28, 4  ;;  %v264_v30 = vpop.permute.xlu1 %263 }
  0x89   : > { %290 = vst.msk [vmem:[#allocation2 + $0x8] sm:$0xf] %vm240_vm0, %v269_v25  ;;  %v270_v31 = vrot.slane %v264_v30, 4 }
  0x8a   : > { %289 = vst.msk [vmem:[#allocation2] sm:$0xff] %vm1644_vm10, %v274_v27  ;;  %v277_v32 = vsel %vm273_vm9, %v272_v29, %v268_v28 }
  0x8b   : > { %298 = vst.msk [vmem:[#allocation2 + $0x8] sm:$0xf] %vm297_vm11, %v1564_v1  ;;  %v275_v33 = vsel %vm273_vm9, %v270_v31, %v264_v30  ;;  %v496_v51 = vpop.permute.xlu0 %495  ;;  %vm828_vm9 = vcmask 277504  }
  0x8c   : > { %296 = vst.msk [vmem:[#allocation2 + $0x2c] sm:$0xf] %vm240_vm0, %v272_v29  ;;  %292 = vst.msk [vmem:[#allocation2 + $0x14] sm:$0xf] %vm240_vm0, %v270_v31  ;;  %v497_v52 = vrot.slane %v496_v51, 4  ;;  %v423_v61 = vpop.permute.xlu1 %422 }
  0x8d   : > { %295 = vst.msk [vmem:[#allocation2 + $0x24] sm:$0xff] %vm1644_vm10, %v277_v32  ;;  %291 = vst.msk [vmem:[#allocation2 + $0xc] sm:$0xff] %vm1644_vm10, %v275_v33  ;;  %v424_v2 = vrot.slane %v423_v61, 4 }
  0x8e   : > { %301 = vst.msk [vmem:[#allocation2 + $0x2c] sm:$0xf] %vm297_vm11, %v1564_v1  ;;  %299 = vst.msk [vmem:[#allocation2 + $0x14] sm:$0xf] %vm297_vm11, %v1564_v1  ;;  %v1672_v35 = vld [vmem:[#allocation2 + $0x18] sm:$0xff]  ;;  %v499_v54 = vsel %vm498_vm12, %v497_v52, %v496_v51  ;;  %vm1708_vm13 = vcmp.ne.s16.totalorder %v497_v52, 0 }
  0x8f   : > { %v355_v34 = vld [vmem:[#allocation2 + $0x20] sm:$0xf]  ;;  %374 = vrot.lane.b32.xlu1 %v1672_v35, %s1571_s30  ;;  %v1689_v44 = vsel %vm1636_vm5, %v1672_v35, 0  ;;  %vm500_vm14 = vcmp.ne.s16.totalorder %v499_v54, 0  ;;  %v426_v6 = vsel %vm425_vm15, %v424_v2, %v423_v61  ;;  %vm1727_vm0 = vcmp.ne.s16.totalorder %v424_v2, 0  ;;  %v697_v17 = vpop.permute.xlu0 %696 }
  0x90   : > { %376 = vrot.lane.b32.xlu0 %v355_v34, %s1571_s30  ;;  %v765_v42 = vld [vmem:[#allocation2 + $0x20] sm:$0xf]  ;;  %v506_v59 = vsel %vm500_vm14, %v1672_v35, 0  ;;  %vm427_vm1 = vcmp.ne.s16.totalorder %v426_v6, 0  ;;  %v698_v22 = vrot.slane %v697_v17, 4  ;;  %v625_v32 = vpop.permute.xlu1 %624  ;;  %vm390_vm12 = vcmask 1043456  }
  0x91   : > { %v1678_v39 = vld [vmem:[#allocation2] sm:$0xff]  ;;  %v433_v12 = vsel %vm427_vm1, %v1672_v35, 0  ;;  %vm600_vm15 = vcmask 908288  }
  0x92   : > { %v351_v38 = vld [vmem:[#allocation2 + $0x8] sm:$0xf]  ;;  %v564_v50 = vld [vmem:[#allocation2 + $0x20] sm:$0xf]  ;;  %v502_v4 = vsel %vm500_vm14, %v1678_v39, 0  ;;  %v429_v20 = vsel %vm427_vm1, %v1678_v39, 0  ;;  %v700_v25 = vsel %vm699_vm2, %v698_v22, %v697_v17 }
  0x93   : > { %v761_v46 = vld [vmem:[#allocation2 + $0x8] sm:$0xf]  ;;  %v491_v57 = vld [vmem:[#allocation2 + $0x20] sm:$0xf]  ;;  %vm1752_vm3 = vcmp.ne.s16.totalorder %v698_v22, 0  ;;  %vm701_vm4 = vcmp.ne.s16.totalorder %v700_v25, 0  ;;  %v826_v56 = vpop.permute.xlu0 %825 }
  0x94   : > { %v1675_v37 = vld [vmem:[#allocation2 + $0x24] sm:$0xff]  ;;  %v1681_v41 = vld [vmem:[#allocation2 + $0xc] sm:$0xff]  ;;  %v507_v58 = vsel %vm1708_vm13, %v491_v57, 0  ;;  %v413_v8 = vld [vmem:[#allocation2 + $0x20] sm:$0xf]  ;;  %v707_v30 = vsel %vm701_vm4, %v1672_v35, 0 }
  0x95   : > { %v357_v36 = vld [vmem:[#allocation2 + $0x2c] sm:$0xf]  ;;  %378 = vrot.lane.b32.xlu1 %v1675_v37, %s1571_s30  ;;  %v353_v40 = vld [vmem:[#allocation2 + $0x14] sm:$0xf]  ;;  %v1694_v45 = vsel %vm1636_vm5, %v1675_v37, 0  ;;  %v508_v63 = vsel %vm500_vm14, %v1675_v37, 0 }
  0x96   : > { %380 = vrot.lane.b32.xlu0 %v357_v36, %s1571_s30  ;;  %v767_v43 = vld [vmem:[#allocation2 + $0x2c] sm:$0xf]  ;;  %v1474_v47 = vcombine.high %v1689_v44, %v1694_v45  ;;  %v1473_v48 = vcombine.low %v1689_v44, %v1694_v45  ;;  %v763_v49 = vld [vmem:[#allocation2 + $0x14] sm:$0xf]  ;;  %v560_v55 = vld [vmem:[#allocation2 + $0x8] sm:$0xf] }
  0x97   : > { %v566_v53 = vld [vmem:[#allocation2 + $0x2c] sm:$0xf]  ;;  %v487_v0 = vld [vmem:[#allocation2 + $0x8] sm:$0xf]  ;;  %v489_v5 = vld [vmem:[#allocation2 + $0x14] sm:$0xf] }
  0x98   : > { %v493_v60 = vld [vmem:[#allocation2 + $0x2c] sm:$0xf]  ;;  %v503_v3 = vsel %vm1708_vm13, %v487_v0, 0  ;;  %v505_v9 = vsel %vm1708_vm13, %v489_v5, 0  ;;  %v504_v10 = vsel %vm500_vm14, %v1681_v41, 0  ;;  %v434_v11 = vsel %vm1727_vm0, %v413_v8, 0 }
  0x99   : > { %366 = vrot.lane.b32.xlu1 %v1678_v39, %s1571_s30  ;;  %v509_v62 = vsel %vm1708_vm13, %v493_v60, 0  ;;  %v415_v13 = vld [vmem:[#allocation2 + $0x2c] sm:$0xf]  ;;  %v435_v15 = vsel %vm427_vm1, %v1675_v37, 0  ;;  %v409_v16 = vld [vmem:[#allocation2 + $0x8] sm:$0xf] }
  0x9a   : > { %368 = vrot.lane.b32.xlu0 %v351_v38, %s1571_s30  ;;  %v436_v14 = vsel %vm1727_vm0, %v415_v13, 0  ;;  %v430_v19 = vsel %vm1727_vm0, %v409_v16, 0  ;;  %v411_v21 = vld [vmem:[#allocation2 + $0x14] sm:$0xf]  ;;  %v431_v24 = vsel %vm427_vm1, %v1681_v41, 0  ;;  %v709_v34 = vsel %vm701_vm4, %v1675_v37, 0 }
  0x9b   : > { %v432_v23 = vsel %vm1727_vm0, %v411_v21, 0  ;;  %v562_v26 = vld [vmem:[#allocation2 + $0x14] sm:$0xf]  ;;  %v693_v28 = vld [vmem:[#allocation2 + $0x20] sm:$0xf]  ;;  %v626_v38 = vrot.slane %v625_v32, 4 }
  0x9c   : > { %v708_v29 = vsel %vm1752_vm3, %v693_v28, 0  ;;  %v695_v31 = vld [vmem:[#allocation2 + $0x2c] sm:$0xf]  ;;  %v689_v36 = vld [vmem:[#allocation2 + $0x8] sm:$0xf]  ;;  %v705_v52 = vsel %vm701_vm4, %v1681_v41, 0 }
  0x9d   : > { %370 = vrot.lane.b32.xlu1 %v1681_v41, %s1571_s30  ;;  %v710_v33 = vsel %vm1752_vm3, %v695_v31, 0  ;;  %vm1771_vm7 = vcmp.ne.s16.totalorder %v626_v38, 0  ;;  %v827_v60 = vrot.slane %v826_v56, 4  ;;  %v824_v8 = vld [vmem:[#allocation2 + $0x2c] sm:$0xf]  ;;  %vm392_vm13 = vcmask 1039360  }
  0x9e   : > { %372 = vrot.lane.b32.xlu0 %v353_v40, %s1571_s30  ;;  %v704_v40 = vsel %vm1752_vm3, %v689_v36, 0  ;;  %vm801_vm14 = vcmask 777216   ;;  %vm543_vm0 = vcmask 916480   ;;  %vm470_vm1 = vcmask 1031168  }
  0x9f   : > { %v829_v0 = vsel %vm828_vm9, %v827_v60, %v826_v56  ;;  %vm1791_vm10 = vcmp.ne.s16.totalorder %v827_v60, 0  ;;  %v1296_v60 = vld [vmem:[%s2047_s4] sm:$0xff] }
  0xa0   : > { %vm830_vm11 = vcmp.ne.s16.totalorder %v829_v0, 0  ;;  %v839_v13 = vsel %vm1791_vm10, %v824_v8, 0 }
  0xa1   : > { %784 = vrot.lane.b32.xlu1 %v1672_v35, %s1572_s6  ;;  %v836_v7 = vsel %vm830_vm11, %v1672_v35, 0 }
  0xa2   : > { %786 = vrot.lane.b32.xlu0 %v765_v42, %s1572_s6  ;;  %v703_v42 = vsel %vm701_vm4, %v1678_v39, 0  ;;  %vm873_vm4 = vcmask 769024  }
  0xa5   : > { %788 = vrot.lane.b32.xlu1 %v1675_v37, %s1572_s6 }
  0xa6   : > { %790 = vrot.lane.b32.xlu0 %v767_v43, %s1572_s6  ;;  %v691_v43 = vld [vmem:[#allocation2 + $0x14] sm:$0xf] }
  0xa7   : > { %v706_v51 = vsel %vm1752_vm3, %v691_v43, 0  ;;  %vm672_vm3 = vcmask 900096  }
  0xa9   : > { %776 = vrot.lane.b32.xlu1 %v1678_v39, %s1572_s6 }
  0xaa   : > { %778 = vrot.lane.b32.xlu0 %v761_v46, %s1572_s6  ;;  %v628_v46 = vsel %vm627_vm6, %v626_v38, %v625_v32 }
  0xab   : > { %vm629_vm8 = vcmp.ne.s16.totalorder %v628_v46, 0 }
  0xac   : > { %v635_v54 = vsel %vm629_vm8, %v1672_v35, 0  ;;  %v633_v5 = vsel %vm629_vm8, %v1681_v41, 0 }
  0xad   : > { %780 = vrot.lane.b32.xlu1 %v1681_v41, %s1572_s6 }
  0xae   : > { %782 = vrot.lane.b32.xlu0 %v763_v49, %s1572_s6 }
  0xb1   : > { %583 = vrot.lane.b32.xlu1 %v1672_v35, %s1573_s7  ;;  %v1548_v35 = vld [vmem:[%s2044_s1 + $0x4] ss:$12 sps:$4 sm:$0xff]  }
  0xb2   : > { %585 = vrot.lane.b32.xlu0 %v564_v50, %s1573_s7  ;;  %v621_v50 = vld [vmem:[#allocation2 + $0x20] sm:$0xf]  ;;  %1206 = vmatprep.mubr.bf16.mxu0 %v1548_v35 }
  0xb5   : > { %587 = vrot.lane.b32.xlu1 %v1675_v37, %s1573_s7 }
  0xb6   : > { %589 = vrot.lane.b32.xlu0 %v566_v53, %s1573_s7  ;;  %v636_v53 = vsel %vm1771_vm7, %v621_v50, 0  ;;  %v935_v50 = vld [vmem:[%s2045_s2 + $0x10] sm:$0xff] }
  0xb9   : > { %575 = vrot.lane.b32.xlu1 %v1678_v39, %s1573_s7 }
  0xba   : > { %577 = vrot.lane.b32.xlu0 %v560_v55, %s1573_s7  ;;  %v623_v55 = vld [vmem:[#allocation2 + $0x2c] sm:$0xf] }
  0xbb   : > { %v638_v57 = vsel %vm1771_vm7, %v623_v55, 0 }
  0xbd   : > { %526 = vrot.lane.b32.xlu1 %v506_v59, %s1574_s8  ;;  %v617_v59 = vld [vmem:[#allocation2 + $0x8] sm:$0xf] }
  0xbe   : > { %528 = vrot.lane.b32.xlu0 %v507_v58, %s1574_s8  ;;  %v637_v58 = vsel %vm629_vm8, %v1675_v37, 0  ;;  %v632_v61 = vsel %vm1771_vm7, %v617_v59, 0  ;;  %v933_v59 = vld [vmem:[%s2045_s2] sm:$0xff] }
  0xc1   : > { %530 = vrot.lane.b32.xlu1 %v508_v63, %s1574_s8  ;;  %v619_v63 = vld [vmem:[#allocation2 + $0x14] sm:$0xf] }
  0xc2   : > { %532 = vrot.lane.b32.xlu0 %v509_v62, %s1574_s8  ;;  %v631_v62 = vsel %vm629_vm8, %v1678_v39, 0 }
  0xc5   : > { %518 = vrot.lane.b32.xlu1 %v502_v4, %s1574_s8  ;;  %v634_v4 = vsel %vm1771_vm7, %v619_v63, 0 }
  0xc6   : > { %520 = vrot.lane.b32.xlu0 %v503_v3, %s1574_s8  ;;  %v822_v3 = vld [vmem:[#allocation2 + $0x20] sm:$0xf] }
  0xc7   : > { %v837_v6 = vsel %vm1791_vm10, %v822_v3, 0 }
  0xc9   : > { %522 = vrot.lane.b32.xlu1 %v504_v10, %s1574_s8 }
  0xca   : > { %524 = vrot.lane.b32.xlu0 %v505_v9, %s1574_s8 }
  0xcd   : > { %453 = vrot.lane.b32.xlu1 %v433_v12, %s1575_s9 }
  0xce   : > { %455 = vrot.lane.b32.xlu0 %v434_v11, %s1575_s9 }
  0xd1   : > { %457 = vrot.lane.b32.xlu1 %v435_v15, %s1575_s9  ;;  %v818_v15 = vld [vmem:[#allocation2 + $0x8] sm:$0xf] }
  0xd2   : > { %459 = vrot.lane.b32.xlu0 %v436_v14, %s1575_s9  ;;  %v838_v14 = vsel %vm830_vm11, %v1675_v37, 0  ;;  %v833_v37 = vsel %vm1791_vm10, %v818_v15, 0 }
  0xd5   : > { %445 = vrot.lane.b32.xlu1 %v429_v20, %s1575_s9 }
  0xd6   : > { %447 = vrot.lane.b32.xlu0 %v430_v19, %s1575_s9 }
  0xd9   : > { %449 = vrot.lane.b32.xlu1 %v431_v24, %s1575_s9  ;;  %v820_v24 = vld [vmem:[#allocation2 + $0x14] sm:$0xf] }
  0xda   : > { %451 = vrot.lane.b32.xlu0 %v432_v23, %s1575_s9  ;;  %v832_v23 = vsel %vm830_vm11, %v1678_v39, 0 }
  0xdd   : > { %579 = vrot.lane.b32.xlu1 %v1681_v41, %s1573_s7 }
  0xde   : > { %581 = vrot.lane.b32.xlu0 %v562_v26, %s1573_s7 }
  0xe1   : > { %727 = vrot.lane.b32.xlu1 %v707_v30, %s1576_s10  ;;  %v834_v30 = vsel %vm830_vm11, %v1681_v41, 0 }
  0xe2   : > { %729 = vrot.lane.b32.xlu0 %v708_v29, %s1576_s10  ;;  %v835_v29 = vsel %vm1791_vm10, %v820_v24, 0 }
  0xe5   : > { %731 = vrot.lane.b32.xlu1 %v709_v34, %s1576_s10 }
  0xe6   : > { %733 = vrot.lane.b32.xlu0 %v710_v33, %s1576_s10 }
  0xe9   : > { %719 = vrot.lane.b32.xlu1 %v703_v42, %s1576_s10 }
  0xea   : > { %721 = vrot.lane.b32.xlu0 %v704_v40, %s1576_s10 }
  0xed   : > { %723 = vrot.lane.b32.xlu1 %v705_v52, %s1576_s10 }
  0xee   : > { %725 = vrot.lane.b32.xlu0 %v706_v51, %s1576_s10 }
  0xf1   : > { %655 = vrot.lane.b32.xlu1 %v635_v54, %s1577_s11  ;;  %v936_v54 = vld [vmem:[%s2045_s2 + $0x18] sm:$0xff] }
  0xf2   : > { %657 = vrot.lane.b32.xlu0 %v636_v53, %s1577_s11 }
  0xf5   : > { %659 = vrot.lane.b32.xlu1 %v637_v58, %s1577_s11 }
  0xf6   : > { %661 = vrot.lane.b32.xlu0 %v638_v57, %s1577_s11 }
  0xf9   : > { %647 = vrot.lane.b32.xlu1 %v631_v62, %s1577_s11 }
  0xfa   : > { %649 = vrot.lane.b32.xlu0 %v632_v61, %s1577_s11 }
  0xfd   : > { %651 = vrot.lane.b32.xlu1 %v633_v5, %s1577_s11  ;;  %v1298_v5 = vld [vmem:[%s2047_s4 + $0x10] sm:$0xff] }
  0xfe   : > { %653 = vrot.lane.b32.xlu0 %v634_v4, %s1577_s11  ;;  %v934_v4 = vld [vmem:[%s2045_s2 + $0x8] sm:$0xff] }
 0x101   : > { %856 = vrot.lane.b32.xlu1 %v836_v7, %s1578_s12  ;;  %v375_v10 = vpop.permute.xlu1 %374 }
 0x102   : > { %858 = vrot.lane.b32.xlu0 %v837_v6, %s1578_s12  ;;  %v377_v9 = vpop.permute.xlu0 %376  ;;  %v386_v12 = vrot.slane %v375_v10, 4 }
 0x103   : > { %v387_v11 = vrot.slane %v377_v9, 4 }
 0x105   : > { %860 = vrot.lane.b32.xlu1 %v838_v14, %s1578_s12  ;;  %v396_v16 = vsel %vm390_vm12, %v386_v12, %v387_v11  ;;  %v1297_v14 = vld [vmem:[%s2047_s4 + $0x8] sm:$0xff] }
 0x106   : > { %862 = vrot.lane.b32.xlu0 %v839_v13, %s1578_s12  ;;  %v1816_v17 = vsel %vm392_vm13, %v375_v10, %v396_v16 }
 0x107   : > { %v379_v20 = vpop.permute.xlu1 %378 }
 0x108   : > { %v381_v19 = vpop.permute.xlu0 %380  ;;  %v388_v22 = vrot.slane %v379_v20, 4 }
 0x109   : > { %v389_v21 = vrot.slane %v381_v19, 4  ;;  %848 = vrot.lane.b32.xlu1 %v832_v23, %s1578_s12 }
 0x10a   : > { %850 = vrot.lane.b32.xlu0 %v833_v37, %s1578_s12 }
 0x10b   : > { %v398_v25 = vsel %vm390_vm12, %v388_v22, %v389_v21  ;;  %v367_v28 = vpop.permute.xlu1 %366  ;;  %v1299_v22 = vld [vmem:[%s2047_s4 + $0x18] sm:$0xff] }
 0x10c   : > { %v1826_v26 = vsel %vm392_vm13, %v379_v20, %v398_v25  ;;  %v369_v27 = vpop.permute.xlu0 %368  ;;  %v382_v34 = vrot.slane %v367_v28, 4 }
 0x10d   : > { %v1477_v31 = vcombine.low %v1816_v17, %v1826_v26  ;;  %v1478_v32 = vcombine.high %v1816_v17, %v1826_v26  ;;  %v383_v33 = vrot.slane %v369_v27, 4  ;;  %852 = vrot.lane.b32.xlu1 %v834_v30, %s1578_s12  ;;  %v343_v17 = vsel %vm1636_vm5, %v1681_v41, 0 }
 0x10e   : > { %854 = vrot.lane.b32.xlu0 %v835_v29, %s1578_s12 }
 0x10f   : > { %v391_v36 = vsel %vm390_vm12, %v382_v34, %v383_v33  ;;  %v371_v42 = vpop.permute.xlu1 %370 }
 0x110   : > { %v1840_v38 = vsel %vm392_vm13, %v367_v28, %v391_v36  ;;  %v373_v40 = vpop.permute.xlu0 %372  ;;  %v384_v46 = vrot.slane %v371_v42, 4 }
 0x111   : > { %v385_v43 = vrot.slane %v373_v40, 4  ;;  %949 = vperm.xlu1 %1544, %v935_v50  }
 0x112   : > { %954 = vperm.xlu0 %1545, %v936_v54  }
 0x113   : > { %v394_v49 = vsel %vm390_vm12, %v384_v46, %v385_v43  ;;  %v785_v53 = vpop.permute.xlu1 %784 }
 0x114   : > { %v1847_v51 = vsel %vm392_vm13, %v371_v42, %v394_v49  ;;  %v787_v52 = vpop.permute.xlu0 %786  ;;  %v796_v58 = vrot.slane %v785_v53, 4 }
 0x115   : > { %v1475_v55 = vcombine.low %v1840_v38, %v1847_v51  ;;  %v1476_v56 = vcombine.high %v1840_v38, %v1847_v51  ;;  %v797_v57 = vrot.slane %v787_v52, 4  ;;  %939 = vperm.xlu1 %1544, %v933_v59  }
 0x116   : > { %1302 = vperm.xlu0 %1545, %v1296_v60  }
 0x117   : > { %v805_v61 = vsel %vm390_vm12, %v796_v58, %v797_v57  ;;  %v789_v0 = vpop.permute.xlu1 %788 }
 0x118   : > { %v1864_v62 = vsel %vm801_vm14, %v785_v53, %v805_v61  ;;  %v791_v63 = vpop.permute.xlu0 %790  ;;  %v798_v3 = vrot.slane %v789_v0, 4 }
 0x119   : > { %v799_v2 = vrot.slane %v791_v63, 4  ;;  %944 = vperm.xlu1 %1544, %v934_v4  }
 0x11a   : > { %1312 = vperm.xlu0 %1545, %v1298_v5  }
 0x11b   : > { %v807_v6 = vsel %vm390_vm12, %v798_v3, %v799_v2  ;;  %v777_v9 = vpop.permute.xlu1 %776 }
 0x11c   : > { %v1874_v7 = vsel %vm801_vm14, %v789_v0, %v807_v6  ;;  %v779_v8 = vpop.permute.xlu0 %778  ;;  %v792_v13 = vrot.slane %v777_v9, 4 }
 0x11d   : > { %v1501_v10 = vcombine.low %v1864_v62, %v1874_v7  ;;  %v1502_v11 = vcombine.high %v1864_v62, %v1874_v7  ;;  %v793_v12 = vrot.slane %v779_v8, 4  ;;  %1307 = vperm.xlu1 %1544, %v1297_v14  }
 0x11f   : > { %v800_v35 = vsel %vm390_vm12, %v792_v13, %v793_v12  ;;  %v781_v19 = vpop.permute.xlu1 %780 }
 0x120   : > { %v1885_v15 = vsel %vm801_vm14, %v777_v9, %v800_v35  ;;  %v783_v16 = vpop.permute.xlu0 %782  ;;  %v794_v21 = vrot.slane %v781_v19, 4 }
 0x121   : > { %v795_v20 = vrot.slane %v783_v16, 4  ;;  %1317 = vperm.xlu1 %1544, %v1299_v22  }
 0x123   : > { %v803_v37 = vsel %vm390_vm12, %v794_v21, %v795_v20  ;;  %v584_v25 = vpop.permute.xlu1 %583 }
 0x124   : > { %v1892_v23 = vsel %vm801_vm14, %v781_v19, %v803_v37  ;;  %v586_v24 = vpop.permute.xlu0 %585  ;;  %v595_v30 = vrot.slane %v584_v25, 4 }
 0x125   : > { %v1499_v27 = vcombine.low %v1885_v15, %v1892_v23  ;;  %v1500_v28 = vcombine.high %v1885_v15, %v1892_v23  ;;  %v596_v29 = vrot.slane %v586_v24, 4 }
 0x127   : > { %v604_v33 = vsel %vm390_vm12, %v595_v30, %v596_v29  ;;  %v588_v40 = vpop.permute.xlu1 %587 }
 0x128   : > { %v1900_v34 = vsel %vm600_vm15, %v584_v25, %v604_v33  ;;  %v590_v36 = vpop.permute.xlu0 %589  ;;  %v597_v43 = vrot.slane %v588_v40, 4 }
 0x129   : > { %v598_v42 = vrot.slane %v590_v36, 4 }
 0x12b   : > { %v606_v46 = vsel %vm390_vm12, %v597_v43, %v598_v42  ;;  %v576_v52 = vpop.permute.xlu1 %575 }
 0x12c   : > { %v1904_v49 = vsel %vm600_vm15, %v588_v40, %v606_v46  ;;  %v578_v50 = vpop.permute.xlu0 %577  ;;  %v591_v58 = vrot.slane %v576_v52, 4 }
 0x12d   : > { %v1489_v53 = vcombine.low %v1900_v34, %v1904_v49  ;;  %v1490_v54 = vcombine.high %v1900_v34, %v1904_v49  ;;  %v592_v57 = vrot.slane %v578_v50, 4  ;;  %v1550_v49 = vld [vmem:[%s2044_s1 + $0x1c] ss:$12 sps:$4 sm:$0xff]  }
 0x12f   : > { %v599_v59 = vsel %vm390_vm12, %v591_v58, %v592_v57  ;;  %v527_v63 = vpop.permute.xlu1 %526 }
 0x130   : > { %v1912_v60 = vsel %vm600_vm15, %v576_v52, %v599_v59  ;;  %v529_v61 = vpop.permute.xlu0 %528  ;;  %v538_v2 = vrot.slane %v527_v63, 4 }
 0x131   : > { %v539_v0 = vrot.slane %v529_v61, 4 }
 0x133   : > { %v531_v4 = vpop.permute.xlu1 %530  ;;  %v547_v8 = vsel %vm390_vm12, %v538_v2, %v539_v0 }
 0x134   : > { %v533_v3 = vpop.permute.xlu0 %532  ;;  %v540_v6 = vrot.slane %v531_v4, 4  ;;  %v548_v14 = vsel %vm543_vm0, %v527_v63, %v547_v8 }
 0x135   : > { %v541_v5 = vrot.slane %v533_v3, 4 }
 0x137   : > { %v549_v9 = vsel %vm390_vm12, %v540_v6, %v541_v5  ;;  %v519_v13 = vpop.permute.xlu1 %518 }
 0x138   : > { %v521_v12 = vpop.permute.xlu0 %520  ;;  %v550_v35 = vsel %vm543_vm0, %v531_v4, %v549_v9  ;;  %v534_v19 = vrot.slane %v519_v13, 4 }
 0x139   : > { %v535_v16 = vrot.slane %v521_v12, 4  ;;  %v1486_v20 = vcombine.high %v548_v14, %v550_v35  ;;  %v1485_v21 = vcombine.low %v548_v14, %v550_v35 }
 0x13b   : > { %1174 = vmatprep.subr.bf16.mxu0 %v1486_v20  ;;  %v523_v37 = vpop.permute.xlu1 %522  ;;  %v542_v24 = vsel %vm390_vm12, %v534_v19, %v535_v16 }
 0x13c   : > { %v525_v22 = vpop.permute.xlu0 %524  ;;  %1175 = vmatpush1.bf16.msra.mxu0 %v1485_v21  ;;  %v536_v29 = vrot.slane %v523_v37, 4  ;;  %v544_v33 = vsel %vm543_vm0, %v519_v13, %v542_v24 }
 0x13d   : > { %v537_v25 = vrot.slane %v525_v22, 4 }
 0x13f   : > { %v545_v30 = vsel %vm390_vm12, %v536_v29, %v537_v25  ;;  %v454_v42 = vpop.permute.xlu1 %453 }
 0x140   : > { %v546_v36 = vsel %vm543_vm0, %v523_v37, %v545_v30  ;;  %v456_v40 = vpop.permute.xlu0 %455  ;;  %v465_v52 = vrot.slane %v454_v42, 4 }
 0x141   : > { %v1483_v43 = vcombine.low %v544_v33, %v546_v36  ;;  %v1484_v46 = vcombine.high %v544_v33, %v546_v36  ;;  %v466_v50 = vrot.slane %v456_v40, 4 }
 0x143   : > { %1176 = vmatprep.subr.bf16.mxu0 %v1484_v46  ;;  %v458_v58 = vpop.permute.xlu1 %457  ;;  %v474_v59 = vsel %vm390_vm12, %v465_v52, %v466_v50 }
 0x144   : > { %v460_v57 = vpop.permute.xlu0 %459  ;;  %1177 = vmatpush1.bf16.msra.mxu0 %v1483_v43  ;;  %v467_v63 = vrot.slane %v458_v58, 4  ;;  %v475_v2 = vsel %vm470_vm1, %v454_v42, %v474_v59 }
 0x145   : > { %v468_v61 = vrot.slane %v460_v57, 4 }
 0x147   : > { %v476_v0 = vsel %vm390_vm12, %v467_v63, %v468_v61  ;;  %v446_v5 = vpop.permute.xlu1 %445 }
 0x148   : > { %v477_v3 = vsel %vm470_vm1, %v458_v58, %v476_v0  ;;  %v448_v4 = vpop.permute.xlu0 %447  ;;  %v461_v12 = vrot.slane %v446_v5, 4 }
 0x149   : > { %v1481_v6 = vcombine.low %v475_v2, %v477_v3  ;;  %v1482_v8 = vcombine.high %v475_v2, %v477_v3  ;;  %v462_v9 = vrot.slane %v448_v4, 4 }
 0x14b   : > { %1178 = vmatprep.subr.bf16.mxu0 %v1482_v8  ;;  %v450_v14 = vpop.permute.xlu1 %449  ;;  %v469_v35 = vsel %vm390_vm12, %v461_v12, %v462_v9 }
 0x14c   : > { %v452_v13 = vpop.permute.xlu0 %451  ;;  %1179 = vmatpush1.bf16.msra.mxu0 %v1481_v6  ;;  %v463_v19 = vrot.slane %v450_v14, 4  ;;  %v471_v21 = vsel %vm470_vm1, %v446_v5, %v469_v35 }
 0x14d   : > { %v464_v16 = vrot.slane %v452_v13, 4 }
 0x14f   : > { %v472_v20 = vsel %vm390_vm12, %v463_v19, %v464_v16  ;;  %v1932_v24 = vpop.permute.xlu1 %579 }
 0x150   : > { %v473_v22 = vsel %vm470_vm1, %v450_v14, %v472_v20  ;;  %v1930_v37 = vpop.permute.xlu0 %581 }
 0x151   : > { %v1479_v25 = vcombine.low %v471_v21, %v473_v22  ;;  %v1480_v29 = vcombine.high %v471_v21, %v473_v22 }
 0x153   : > { %1180 = vmatprep.subr.bf16.mxu0 %v1480_v29  ;;  %v728_v33 = vpop.permute.xlu1 %727 }
 0x154   : > { %v730_v30 = vpop.permute.xlu0 %729  ;;  %1181 = vmatpush1.bf16.msra.mxu0 %v1479_v25  ;;  %v739_v46 = vrot.slane %v728_v33, 4 }
 0x155   : > { %1182 = vmatprep.subr.bf16.mxu0 %v1478_v32  ;;  %v342_v32 = vsel %vm1636_vm5, %v1678_v39, 0  ;;  %v740_v39 = vrot.slane %v730_v30, 4  ;;  %vm744_vm5 = vcmask 785408  }
 0x156   : > { %v1472_v26 = vcombine.high %v342_v32, %v343_v17 }
 0x157   : > { %v732_v40 = vpop.permute.xlu1 %731  ;;  %v748_v44 = vsel %vm390_vm12, %v739_v46, %v740_v39 }
 0x158   : > { %v734_v36 = vpop.permute.xlu0 %733  ;;  %1183 = vmatpush1.bf16.msra.mxu0 %v1477_v31 }
 0x159   : > { %1184 = vmatprep.subr.bf16.mxu0 %v1476_v56  ;;  %v742_v51 = vrot.slane %v734_v36, 4  ;;  %v1471_v56 = vcombine.low %v342_v32, %v343_v17  ;;  %v594_v36 = vrot.slane %v1930_v37, 4 }
 0x15b   : > { %v720_v43 = vpop.permute.xlu1 %719 }
 0x15c   : > { %v722_v42 = vpop.permute.xlu0 %721  ;;  %1185 = vmatpush1.bf16.msra.mxu0 %v1475_v55  ;;  %v741_v55 = vrot.slane %v732_v40, 4 }
 0x15d   : > { %1186 = vmatprep.subr.bf16.mxu0 %v1474_v47  ;;  %v736_v45 = vrot.slane %v722_v42, 4 }
 0x15e   : > { %v750_v41 = vsel %vm390_vm12, %v741_v55, %v742_v51 }
 0x15f   : > { %v724_v38 = vpop.permute.xlu1 %723  ;;  %v751_v57 = vsel %vm744_vm5, %v732_v40, %v750_v41  ;;  %v593_v40 = vrot.slane %v1932_v24, 4 }
 0x160   : > { %v726_v31 = vpop.permute.xlu0 %725  ;;  %1187 = vmatpush1.bf16.msra.mxu0 %v1473_v48  ;;  %v737_v47 = vrot.slane %v724_v38, 4  ;;  %v735_v48 = vrot.slane %v720_v43, 4 }
 0x161   : > { %1188 = vmatprep.subr.bf16.mxu0 %v1472_v26  ;;  %v738_v52 = vrot.slane %v726_v31, 4  ;;  %v602_v51 = vsel %vm390_vm12, %v593_v40, %v594_v36 }
 0x162   : > { %v743_v3 = vsel %vm390_vm12, %v735_v48, %v736_v45 }
 0x163   : > { %v656_v18 = vpop.permute.xlu1 %655  ;;  %v746_v61 = vsel %vm390_vm12, %v737_v47, %v738_v52 }
 0x164   : > { %v658_v50 = vpop.permute.xlu0 %657  ;;  %1189 = vmatpush1.bf16.msra.mxu0 %v1471_v56  ;;  %v667_v5 = vrot.slane %v656_v18, 4  ;;  %v747_v6 = vsel %vm744_vm5, %v724_v38, %v746_v61 }
 0x165   : > { %1190 = vmatprep.subr.bf16.mxu0 %v1502_v11  ;;  %v749_v11 = vsel %vm744_vm5, %v728_v33, %v748_v44  ;;  %v668_v4 = vrot.slane %v658_v50, 4  ;;  %v603_v50 = vsel %vm600_vm15, %v1932_v24, %v602_v51 }
 0x166   : > { %v1498_v2 = vcombine.high %v749_v11, %v751_v57  ;;  %v1497_v8 = vcombine.low %v749_v11, %v751_v57  ;;  %v1487_v11 = vcombine.low %v1912_v60, %v603_v50 }
 0x167   : > { %v660_v59 = vpop.permute.xlu1 %659  ;;  %v676_v12 = vsel %vm390_vm12, %v667_v5, %v668_v4  ;;  %v1552_v5 = vld [vmem:[%s2044_s1 + $0x18] ss:$12 sps:$4 sm:$0xff]  }
 0x168   : > { %v662_v58 = vpop.permute.xlu0 %661  ;;  %1191 = vmatpush2.bf16.msra.mxu0 %v1501_v10  ;;  %v669_v0 = vrot.slane %v660_v59, 4  ;;  %v677_v20 = vsel %vm672_vm3, %v656_v18, %v676_v12 }
 0x169   : > { %v670_v63 = vrot.slane %v662_v58, 4  ;;  %1192 = vmatprep.subr.bf16.mxu0 %v1500_v28  ;;  %v745_v28 = vsel %vm744_vm5, %v720_v43, %v743_v3  ;;  %v1488_v58 = vcombine.high %v1912_v60, %v603_v50  ;;  %v1549_v60 = vld [vmem:[%s2044_s1 + $0x8] ss:$12 sps:$4 sm:$0xff]  }
 0x16a   : > { %v1496_v9 = vcombine.high %v745_v28, %v747_v6 }
 0x16b   : > { %v648_v7 = vpop.permute.xlu1 %647  ;;  %v678_v10 = vsel %vm390_vm12, %v669_v0, %v670_v63 }
 0x16c   : > { %v650_v62 = vpop.permute.xlu0 %649  ;;  %1193 = vmatpush2.bf16.msra.mxu0 %v1499_v27  ;;  %v663_v14 = vrot.slane %v648_v7, 4  ;;  %v679_v35 = vsel %vm672_vm3, %v660_v59, %v678_v10  ;;  %v1495_v27 = vcombine.low %v745_v28, %v747_v6  ;;  %v1553_v6 = vld [vmem:[%s2044_s1 + $0x20] ss:$12 sps:$4 sm:$0xff]  }
 0x16d   : > { %1194 = vmatprep.subr.bf16.mxu0 %v1498_v2  ;;  %v664_v13 = vrot.slane %v650_v62, 4  ;;  %v1494_v21 = vcombine.high %v677_v20, %v679_v35  ;;  %v1493_v32 = vcombine.low %v677_v20, %v679_v35  ;;  %v1546_v2 = vld [vmem:[%s2044_s1] ss:$12 sps:$4 sm:$0xff]  }
 0x16f   : > { %v652_v19 = vpop.permute.xlu1 %651  ;;  %v671_v22 = vsel %vm390_vm12, %v663_v14, %v664_v13 }
 0x170   : > { %v654_v16 = vpop.permute.xlu0 %653  ;;  %1195 = vmatpush2.bf16.msra.mxu0 %v1497_v8  ;;  %v665_v23 = vrot.slane %v652_v19, 4  ;;  %v673_v17 = vsel %vm672_vm3, %v648_v7, %v671_v22 }
 0x171   : > { %v666_v15 = vrot.slane %v654_v16, 4  ;;  %1196 = vmatprep.subr.bf16.mxu0 %v1496_v9 }
 0x173   : > { %v674_v25 = vsel %vm390_vm12, %v665_v23, %v666_v15  ;;  %v857_v33 = vpop.permute.xlu1 %856 }
 0x174   : > { %v675_v29 = vsel %vm672_vm3, %v652_v19, %v674_v25  ;;  %v859_v30 = vpop.permute.xlu0 %858  ;;  %1197 = vmatpush2.bf16.msra.mxu0 %v1495_v27  ;;  %v868_v43 = vrot.slane %v857_v33, 4 }
 0x175   : > { %v869_v42 = vrot.slane %v859_v30, 4  ;;  %1198 = vmatprep.subr.bf16.mxu0 %v1494_v21  ;;  %v1492_v26 = vcombine.high %v673_v17, %v675_v29  ;;  %v1491_v39 = vcombine.low %v673_v17, %v675_v29 }
 0x177   : > { %v861_v38 = vpop.permute.xlu1 %860  ;;  %v877_v37 = vsel %vm390_vm12, %v868_v43, %v869_v42 }
 0x178   : > { %v863_v31 = vpop.permute.xlu0 %862  ;;  %1199 = vmatpush2.bf16.msra.mxu0 %v1493_v32  ;;  %v870_v56 = vrot.slane %v861_v38, 4  ;;  %v878_v52 = vsel %vm873_vm4, %v857_v33, %v877_v37 }
 0x179   : > { %v871_v55 = vrot.slane %v863_v31, 4  ;;  %1200 = vmatprep.subr.bf16.mxu0 %v1492_v26 }
 0x17b   : > { %v879_v46 = vsel %vm390_vm12, %v870_v56, %v871_v55  ;;  %v849_v41 = vpop.permute.xlu1 %848 }
 0x17c   : > { %v851_v18 = vpop.permute.xlu0 %850  ;;  %1201 = vmatpush2.bf16.msra.mxu0 %v1491_v39  ;;  %v880_v47 = vsel %vm873_vm4, %v861_v38, %v879_v46  ;;  %v864_v45 = vrot.slane %v849_v41, 4 }
 0x17d   : > { %v865_v44 = vrot.slane %v851_v18, 4  ;;  %1202 = vmatprep.subr.bf16.mxu0 %v1490_v54  ;;  %v1506_v48 = vcombine.high %v878_v52, %v880_v47  ;;  %v1505_v57 = vcombine.low %v878_v52, %v880_v47 }
 0x17f   : > { %1239 = vmatprep.subr.bf16.mxu1 %v1506_v48  ;;  %v853_v24 = vpop.permute.xlu1 %852  ;;  %v872_v61 = vsel %vm390_vm12, %v864_v45, %v865_v44 }
 0x180   : > { %v855_v59 = vpop.permute.xlu0 %854  ;;  %1203 = vmatpush2.bf16.msra.mxu0 %v1489_v53  ;;  %1240 = vmatpush1.bf16.msra.mxu1 %v1505_v57  ;;  %v866_v0 = vrot.slane %v853_v24, 4  ;;  %v874_v3 = vsel %vm873_vm4, %v849_v41, %v872_v61  ;;  %v1555_v61 = vld [vmem:[%s2046_s3 + $0x8] sm:$0xff]  }
 0x181   : > { %v867_v63 = vrot.slane %v855_v59, 4  ;;  %1204 = vmatprep.subr.bf16.mxu0 %v1488_v58 }
 0x183   : > { %v875_v54 = vsel %vm390_vm12, %v866_v0, %v867_v63 }
 0x184   : > { %v876_v34 = vsel %vm873_vm4, %v853_v24, %v875_v54  ;;  %1205 = vmatpush2.bf16.msra.mxu0 %v1487_v11  ;;  %v1554_v24 = vld [vmem:[%s2046_s3] sm:$0xff]  }
 0x185   : > { %v1503_v53 = vcombine.low %v874_v3, %v876_v34  ;;  %v1504_v4 = vcombine.high %v874_v3, %v876_v34 }
 0x187   : > { %1207 = vmatmul.mubr.bf16.vlgmr.msra.gmra.mxu0 %v1546_v2  ;;  %1241 = vmatprep.subr.bf16.mxu1 %v1504_v4 }
 0x188   : > { %1242 = vmatpush1.bf16.msra.mxu1 %v1503_v53  ;;  %1216 = vmatprep.mubr.bf16.mxu0 %v1550_v49 }
 0x18b   : > { %1507 = vmatmul.mubr.msk.bf16.vlgmr.msra.gmra.mxu1 %vm699_vm2, %v1549_v60 }
 0x18c   : > { %1269 = vmatprep.mubr.bf16.mxu1 %v1564_v1  ;;  %v950_v7 = vpop.permute.xlu1 %949 }
 0x18d   : > { %v955_v20 = vpop.permute.xlu0 %954 }
 0x18f   : > { %1217 = vmatmul.mubr.bf16.gmra.mxu0 %v1552_v5 }
 0x190   : > { %v940_v13 = vpop.permute.xlu1 %939 }
 0x191   : > { %v1303_v63 = vpop.permute.xlu0 %1302 }
 0x193   : > { %1508 = vmatmul.mubr.msk.bf16.gmra.mxu1 %vm699_vm2, %v1553_v6 }
 0x194   : > { %1368 = vmatprep.mubr.bf16.mxu1 %v1564_v1  ;;  %v945_v27 = vpop.permute.xlu1 %944 }
 0x195   : > { %v1313_v4 = vpop.permute.xlu0 %1312 }
 0x198   : > { %v1308_v3 = vpop.permute.xlu1 %1307 }
 0x247   : > { %v1208_v62 = vpop.f32.mrf.mxu0 }
 0x248   : > { %v1209_v26 = vadd.f32 %v1208_v62, %v940_v13 }
 0x249   : > { %v1210_v10 = vpop.f32.mrf.mxu0 }
 0x24a   : > { %v1211_v36 = vadd.f32 %v1210_v10, %v940_v13 }
 0x24b   : > { %v1212_v8 = vpop.f32.mrf.mxu0  ;;  %v1261_v28 = vpop.f32.mrf.mxu1 }
 0x24c   : > { %v1213_v31 = vadd.f32 %v1212_v8, %v945_v27  ;;  %v1262_v41 = vadd.f32 %v1261_v28, %v1209_v26 }
 0x24d   : > { %v1214_v9 = vpop.f32.mrf.mxu0  ;;  %v1263_v12 = vpop.f32.mrf.mxu1 }
 0x24e   : > { %v1215_v29 = vadd.f32 %v1214_v9, %v945_v27  ;;  %v1264_v55 = vadd.f32 %v1263_v12, %v1211_v36  ;;  %v1280_v58 = vmax.f32 %v1262_v41, 0.0 }
 0x24f   : > { %v1218_v14 = vpop.f32.mrf.mxu0  ;;  %v1265_v35 = vpop.f32.mrf.mxu1 }
 0x250   : > { %v1219_v21 = vadd.f32 %v1218_v14, %v950_v7  ;;  %v1266_v37 = vadd.f32 %v1265_v35, %v1213_v31  ;;  %v1281_v47 = vmax.f32 %v1264_v55, 0.0 }
 0x251   : > { %v1220_v16 = vpop.f32.mrf.mxu0  ;;  %v1267_v19 = vpop.f32.mrf.mxu1 }
 0x252   : > { %v1221_v30 = vadd.f32 %v1220_v16, %v950_v7  ;;  %v1268_v42 = vadd.f32 %v1267_v19, %v1215_v29  ;;  %v1282_v45 = vmax.f32 %v1266_v37, 0.0  ;;  %v1318_v7 = vpop.permute.xlu1 %1317 }
 0x253   : > { %v1222_v15 = vpop.f32.mrf.mxu0  ;;  %v1271_v23 = vpop.f32.mrf.mxu1 }
 0x254   : > { %v1223_v33 = vadd.f32 %v1222_v15, %v955_v20  ;;  %v1272_v38 = vadd.f32 %v1271_v23, %v1219_v21  ;;  %v1283_v46 = vmax.f32 %v1268_v42, 0.0  ;;  %v1292_v59 = vpack.c.bf16 %v1282_v45, %v1280_v58 }
 0x255   : > { %v1224_v22 = vpop.f32.mrf.mxu0  ;;  %v1273_v25 = vpop.f32.mrf.mxu1 }
 0x256   : > { %v1225_v43 = vadd.f32 %v1224_v22, %v955_v20  ;;  %v1274_v32 = vadd.f32 %v1273_v25, %v1221_v30  ;;  %v1284_v52 = vmax.f32 %v1272_v38, 0.0  ;;  %v1293_v57 = vpack.c.bf16 %v1283_v46, %v1281_v47 }
 0x257   : > { %v1275_v40 = vpop.f32.mrf.mxu1 }
 0x258   : > { %v1276_v17 = vadd.f32 %v1275_v40, %v1223_v33  ;;  %v1285_v50 = vmax.f32 %v1274_v32, 0.0 }
 0x259   : > { %v1277_v51 = vpop.f32.mrf.mxu1 }
 0x25a   : > { %v1278_v56 = vadd.f32 %v1277_v51, %v1225_v43  ;;  %v1286_v39 = vmax.f32 %v1276_v17, 0.0 }
 0x25c   : > { %v1287_v18 = vmax.f32 %v1278_v56, 0.0  ;;  %v1294_v48 = vpack.c.bf16 %v1286_v39, %v1284_v52 }
 0x25e   : > { %v1295_v44 = vpack.c.bf16 %v1287_v18, %v1285_v50 }
 0x260   : > { %1348 = vmatprep.subr.bf16.mxu1 %v1295_v44 }
 0x261   : > { %1349 = vmatpush1.bf16.msra.mxu1 %v1294_v48 }
 0x262   : > { %1350 = vmatprep.subr.bf16.mxu1 %v1293_v57 }
 0x265   : > { %1351 = vmatpush1.bf16.msra.mxu1 %v1292_v59 }
 0x268   : > { %1511 = vmatmul.mubr.msk.bf16.vlgmr.msra.gmra.mxu1 %vm699_vm2, %v1554_v24 }
 0x269   : > { %1378 = vmatprep.mubr.bf16.mxu1 %v1564_v1 }
 0x270   : > { %1512 = vmatmul.mubr.msk.bf16.gmra.mxu1 %vm699_vm2, %v1555_v61 }
 0x328   : > { %v1370_v0 = vpop.f32.mrf.mxu1 }
 0x329   : > { %v1371_v11 = vadd.f32 %v1370_v0, %v1303_v63 }
 0x32a   : > { %v1372_v54 = vpop.f32.mrf.mxu1 }
 0x32b   : > { %1389 = vst [vmem:[%s224_s28] sm:$0xff] %v1371_v11  ;;  %v1373_v2 = vadd.f32 %v1372_v54, %v1303_v63 }
 0x32c   : > { %v1374_v34 = vpop.f32.mrf.mxu1 }
 0x32d   : > { %1390 = vst [vmem:[%s224_s28 + $0x8] sm:$0xff] %v1373_v2  ;;  %v1375_v1 = vadd.f32 %v1374_v34, %v1308_v3 }
 0x32e   : > { %v1376_v49 = vpop.f32.mrf.mxu1 }
 0x32f   : > { %1391 = vst [vmem:[%s224_s28 + $0x10] sm:$0xff] %v1375_v1  ;;  %v1377_v53 = vadd.f32 %v1376_v49, %v1308_v3 }
 0x330   : > { %v1380_v60 = vpop.f32.mrf.mxu1 }
 0x331   : > { %1392 = vst [vmem:[%s224_s28 + $0x18] sm:$0xff] %v1377_v53  ;;  %v1381_v5 = vadd.f32 %v1380_v60, %v1313_v4 }
 0x332   : > { %v1382_v6 = vpop.f32.mrf.mxu1 }
 0x333   : > { %1393 = vst [vmem:[%s224_s28 + $0x20] sm:$0xff] %v1381_v5  ;;  %v1383_v62 = vadd.f32 %v1382_v6, %v1313_v4 }
 0x334   : > { %v1384_v10 = vpop.f32.mrf.mxu1 }
 0x335   : > { %1394 = vst [vmem:[%s224_s28 + $0x28] sm:$0xff] %v1383_v62  ;;  %v1385_v8 = vadd.f32 %v1384_v10, %v1318_v7 }
 0x336   : > { %v1386_v28 = vpop.f32.mrf.mxu1 }
 0x337   : > { %1395 = vst [vmem:[%s224_s28 + $0x30] sm:$0xff] %v1385_v8  ;;  %v1387_v9 = vadd.f32 %v1386_v28, %v1318_v7 }
 0x339   : > { %1396 = vst [vmem:[%s224_s28 + $0x38] sm:$0xff] %v1387_v9 }
 0x33a PF: > { %s15_s18 = sadd.s32 1, %s1562_s18  }
 0x33b   : > { %p12_p4 = scmp.ge.s32.totalorder %s15_s18, 4  }
 0x33d   :  { %14 = sbr.rel (!%p12_p4) target bundleno = 1 (0x1), region = 70 }

</bundles_post_ra>
